<compile_context>
chip_gen: v7x
topology: tpu7x:2x2x1
jax: 0.10.0
libtpu: 0.0.40
codegen_flags: <defaults>
</compile_context>

<pallas_src>
import jax
import jax.numpy as jnp
from jax.experimental import pallas as pl
from jax.experimental.pallas import tpu as pltpu

ETA = 1e-6
HIDDEN = 64
HEAD = 64                # lanes reserved per head in the packed output
OUT_LANES = 2 * HEAD     # 128 -> single lane-dense (unmasked) store
ROW = 16                 # batch-row alignment (bf16 sublane tile is 16)


def _round_up(n, m):
    return ((n + m - 1) // m) * m


def encoder_kernel(x_ref, w1_ref, w2_ref, w3_ref, b_ref, out_ref):
    # fc1 + ReLU  (bf16 MXU inputs, f32 accumulation, f32 elementwise).
    h = jnp.dot(x_ref[...], w1_ref[...], preferred_element_type=jnp.float32)
    h = jnp.maximum(h + b_ref[0:1, :HIDDEN], 0.0)

    # fc2 + ReLU.
    h = jnp.dot(h.astype(jnp.bfloat16), w2_ref[...],
                preferred_element_type=jnp.float32)
    h = jnp.maximum(h + b_ref[1:2, :HIDDEN], 0.0)

    # Fused heads: one matmul into a single 128-lane slab.
    #   lanes [0, 64)   -> mu
    #   lanes [64, 128) -> softplus(pre) + eta
    z = jnp.dot(h.astype(jnp.bfloat16), w3_ref[...],
                preferred_element_type=jnp.float32) + b_ref[2:3, :]
    sp = jnp.maximum(z, 0.0) + jnp.log1p(jnp.exp(-jnp.abs(z))) + ETA
    lane = jax.lax.broadcasted_iota(jnp.int32, z.shape, dimension=1)
    out_ref[...] = jnp.where(lane < HEAD, z, sp).astype(out_ref.dtype)


def mhd_label_mmvae_gaussian_encoder(x, params, latent_dim, *, tile_b=2048):
    """Pallas-backed forward pass.

    x: [B, 10] float32 (cast to bf16 for the MXU inside the wrapper).
    Returns (mu, scale), each [B, latent_dim] float32.
    """
    if latent_dim > HEAD:
        raise ValueError(f"packed-head layout supports latent_dim <= {HEAD}")
    w1, w2, w3, b_all = params
    B, in_dim = x.shape

    # Batch padding / tile selection.
    pad_b = _round_up(max(B, 1), ROW)
    # Cap tile so double-buffered in/out streams (+ intermediates) fit v5e's
    # 16 MiB scoped-VMEM default with plenty of headroom (~1.5 KiB per row).
    tile_b = max(ROW, min(_round_up(tile_b, ROW), 4096))
    if tile_b >= pad_b:
        if pad_b >= 2 * ROW:
            # v7x megacore: keep >= 2 grid steps so both TensorCores get work.
            tile_b = _round_up(pl.cdiv(pad_b, 2), ROW)
        else:
            tile_b = pad_b
    pad_b = _round_up(pad_b, tile_b)

    xb = x.astype(jnp.bfloat16)
    if pad_b != B:
        xb = jnp.pad(xb, ((0, pad_b - B), (0, 0)))

    grid = (pad_b // tile_b,)

    def const_spec(arr):
        # Constant block index => DMA'd once, stays VMEM-resident across tiles.
        return pl.BlockSpec(arr.shape, lambda i: (0, 0))

    out = pl.pallas_call(
        encoder_kernel,
        grid=grid,
        in_specs=[pl.BlockSpec((tile_b, in_dim), lambda i: (i, 0)),
                  const_spec(w1), const_spec(w2), const_spec(w3),
                  const_spec(b_all)],
        out_specs=pl.BlockSpec((tile_b, OUT_LANES), lambda i: (i, 0)),
        out_shape=jax.ShapeDtypeStruct((pad_b, OUT_LANES), jnp.float32),
        compiler_params=pltpu.CompilerParams(
            dimension_semantics=("parallel",)),
    )(xb, w1, w2, w3, b_all)

    # Slice the packed slab back to (mu, scale). Consumers that can read the
    # packed layout directly should use `out` to skip this compaction copy.
    mu = out[:B, :latent_dim]
    scale = out[:B, HEAD:HEAD + latent_dim]
    return mu, scale


def init_params(key, latent_dim, hidden=HIDDEN, in_dim=10):
    """torch.nn.Linear-style init: uniform(-1/sqrt(fan_in), 1/sqrt(fan_in)).
    Weights stored [in, out] bf16; head weights fused/zero-padded into a
    single [hidden, 128] matrix; all biases packed into one f32 [3, 128]."""

    def linear(k, fan_in, fan_out):
        kw, kb = jax.random.split(k)
        bound = 1.0 / (fan_in ** 0.5)
        w = jax.random.uniform(kw, (fan_in, fan_out), jnp.float32, -bound, bound)
        b = jax.random.uniform(kb, (fan_out,), jnp.float32, -bound, bound)
        return w, b

    k1, k2, k3, k4 = jax.random.split(key, 4)
    w1, b1 = linear(k1, in_dim, hidden)
    w2, b2 = linear(k2, hidden, hidden)
    w31, b31 = linear(k3, hidden, latent_dim)
    w32, b32 = linear(k4, hidden, latent_dim)

    w3 = jnp.zeros((hidden, OUT_LANES), jnp.float32)
    w3 = w3.at[:, :latent_dim].set(w31)
    w3 = w3.at[:, HEAD:HEAD + latent_dim].set(w32)

    b_all = jnp.zeros((3, OUT_LANES), jnp.float32)
    b_all = b_all.at[0, :hidden].set(b1)
    b_all = b_all.at[1, :hidden].set(b2)
    b_all = b_all.at[2, :latent_dim].set(b31)
    b_all = b_all.at[2, HEAD:HEAD + latent_dim].set(b32)

    return (w1.astype(jnp.bfloat16), w2.astype(jnp.bfloat16),
            w3.astype(jnp.bfloat16), b_all)


def reference_forward(x, params, latent_dim):
    """Pure-JAX reference mirroring the PyTorch forward (same bf16 matmul
    inputs / f32 accumulation as the kernel)."""
    w1, w2, w3, b_all = params
    b1 = b_all[0:1, :HIDDEN]
    b2 = b_all[1:2, :HIDDEN]
    b3 = b_all[2:3, :]

    def dot(a, w):
        return jnp.dot(a.astype(jnp.bfloat16), w,
                       preferred_element_type=jnp.float32)

    h = jnp.maximum(dot(x, w1) + b1, 0.0)
    h = jnp.maximum(dot(h, w2) + b2, 0.0)
    z = dot(h, w3) + b3
    mu = z[:, :latent_dim]
    scale = jax.nn.softplus(z[:, HEAD:HEAD + latent_dim]) + ETA
    return mu, scale


if __name__ == "__main__":
    latent_dim = 32
    batch = 8

    key = jax.random.PRNGKey(0)
    kx, kp = jax.random.split(key)
    x = jax.random.normal(kx, (batch, 10), jnp.float32)
    params = init_params(kp, latent_dim)

    mu, scale = mhd_label_mmvae_gaussian_encoder(x, params, latent_dim)
    mu = jax.block_until_ready(mu)
    scale = jax.block_until_ready(scale)

    mu_ref, scale_ref = reference_forward(x, params, latent_dim)

    assert mu.shape == (batch, latent_dim), mu.shape
    assert scale.shape == (batch, latent_dim), scale.shape
    assert jnp.allclose(mu, mu_ref, atol=1e-4, rtol=1e-4), (
        float(jnp.max(jnp.abs(mu - mu_ref))))
    assert jnp.allclose(scale, scale_ref, atol=1e-4, rtol=1e-4), (
        float(jnp.max(jnp.abs(scale - scale_ref))))
    assert bool(jnp.all(scale > 0.0))

    print("KERNEL_OK")
</pallas_src>

<mosaic_0001>
module attributes {stable_mosaic.version = 11 : i64} {
  func.func @encoder_kernel(%arg0: i32, %arg1: memref<16x10xbf16, #tpu.memory_space<vmem>>, %arg2: memref<10x64xbf16, #tpu.memory_space<vmem>>, %arg3: memref<64x64xbf16, #tpu.memory_space<vmem>>, %arg4: memref<64x128xbf16, #tpu.memory_space<vmem>>, %arg5: memref<3x128xf32, #tpu.memory_space<vmem>>, %arg6: memref<16x128xf32, #tpu.memory_space<vmem>>) attributes {dimension_semantics = [#tpu.dimension_semantics<parallel>], iteration_bounds = array<i64: 1>, scalar_prefetch = 0 : i64, scratch_operands = 0 : i64, tpu.core_type = #tpu.core_type<tc>, window_params = [{transform_indices = @transform_0, window_bounds = array<i64: 16, 10>}, {pipeline_mode = #tpu.pipeline_mode<synchronous>, transform_indices = @transform_1, window_bounds = array<i64: 10, 64>}, {pipeline_mode = #tpu.pipeline_mode<synchronous>, transform_indices = @transform_2, window_bounds = array<i64: 64, 64>}, {pipeline_mode = #tpu.pipeline_mode<synchronous>, transform_indices = @transform_3, window_bounds = array<i64: 64, 128>}, {pipeline_mode = #tpu.pipeline_mode<synchronous>, transform_indices = @transform_4, window_bounds = array<i64: 3, 128>}, {transform_indices = @transform_5, window_bounds = array<i64: 16, 128>}]} {
    %c0 = arith.constant 0 : index
    %c0_0 = arith.constant 0 : index
    %0 = vector.load %arg1[%c0, %c0_0] : memref<16x10xbf16, #tpu.memory_space<vmem>>, vector<16x10xbf16>
    %c0_1 = arith.constant 0 : index
    %c0_2 = arith.constant 0 : index
    %1 = vector.load %arg2[%c0_1, %c0_2] : memref<10x64xbf16, #tpu.memory_space<vmem>>, vector<10x64xbf16>
    %cst = arith.constant dense<0.000000e+00> : vector<16x64xf32>
    %2 = tpu.matmul %0, %1, %cst {dimension_numbers = #tpu.dot_dimension_numbers<[1], [0], [0], [1], [0, 0, 1, 1], [], []>} : vector<16x10xbf16>, vector<10x64xbf16>, vector<16x64xf32> -> vector<16x64xf32>
    %c0_3 = arith.constant 0 : index
    %c0_4 = arith.constant 0 : index
    %3 = vector.load %arg5[%c0_3, %c0_4] : memref<3x128xf32, #tpu.memory_space<vmem>>, vector<1x64xf32>
    %4 = vector.broadcast %3 : vector<1x64xf32> to vector<16x64xf32>
    %5 = arith.addf %2, %4 : vector<16x64xf32>
    %cst_5 = arith.constant 0.000000e+00 : f32
    %6 = vector.broadcast %cst_5 : f32 to vector<16x64xf32>
    %7 = arith.maximumf %5, %6 : vector<16x64xf32>
    %8 = arith.truncf %7 : vector<16x64xf32> to vector<16x64xbf16>
    %c0_6 = arith.constant 0 : index
    %c0_7 = arith.constant 0 : index
    %9 = vector.load %arg3[%c0_6, %c0_7] : memref<64x64xbf16, #tpu.memory_space<vmem>>, vector<64x64xbf16>
    %cst_8 = arith.constant dense<0.000000e+00> : vector<16x64xf32>
    %10 = tpu.matmul %8, %9, %cst_8 {dimension_numbers = #tpu.dot_dimension_numbers<[1], [0], [0], [1], [0, 0, 1, 1], [], []>} : vector<16x64xbf16>, vector<64x64xbf16>, vector<16x64xf32> -> vector<16x64xf32>
    %c1 = arith.constant 1 : index
    %c0_9 = arith.constant 0 : index
    %11 = vector.load %arg5[%c1, %c0_9] : memref<3x128xf32, #tpu.memory_space<vmem>>, vector<1x64xf32>
    %12 = vector.broadcast %11 : vector<1x64xf32> to vector<16x64xf32>
    %13 = arith.addf %10, %12 : vector<16x64xf32>
    %cst_10 = arith.constant 0.000000e+00 : f32
    %14 = vector.broadcast %cst_10 : f32 to vector<16x64xf32>
    %15 = arith.maximumf %13, %14 : vector<16x64xf32>
    %16 = arith.truncf %15 : vector<16x64xf32> to vector<16x64xbf16>
    %c0_11 = arith.constant 0 : index
    %c0_12 = arith.constant 0 : index
    %17 = vector.load %arg4[%c0_11, %c0_12] : memref<64x128xbf16, #tpu.memory_space<vmem>>, vector<64x128xbf16>
    %cst_13 = arith.constant dense<0.000000e+00> : vector<16x128xf32>
    %18 = tpu.matmul %16, %17, %cst_13 {dimension_numbers = #tpu.dot_dimension_numbers<[1], [0], [0], [1], [0, 0, 1, 1], [], []>} : vector<16x64xbf16>, vector<64x128xbf16>, vector<16x128xf32> -> vector<16x128xf32>
    %c2 = arith.constant 2 : index
    %c0_14 = arith.constant 0 : index
    %19 = vector.load %arg5[%c2, %c0_14] : memref<3x128xf32, #tpu.memory_space<vmem>>, vector<1x128xf32>
    %20 = vector.broadcast %19 : vector<1x128xf32> to vector<16x128xf32>
    %21 = arith.addf %18, %20 : vector<16x128xf32>
    %cst_15 = arith.constant 0.000000e+00 : f32
    %22 = vector.broadcast %cst_15 : f32 to vector<16x128xf32>
    %23 = arith.maximumf %21, %22 : vector<16x128xf32>
    %24 = math.absf %21 : vector<16x128xf32>
    %cst_16 = arith.constant 0.000000e+00 : f32
    %25 = vector.broadcast %cst_16 : f32 to vector<16x128xf32>
    %26 = arith.subf %25, %24 : vector<16x128xf32>
    %27 = math.exp %26 : vector<16x128xf32>
    %28 = math.log1p %27 : vector<16x128xf32>
    %29 = arith.addf %23, %28 : vector<16x128xf32>
    %cst_17 = arith.constant 9.99999997E-7 : f32
    %30 = vector.broadcast %cst_17 : f32 to vector<16x128xf32>
    %31 = arith.addf %29, %30 : vector<16x128xf32>
    %32 = tpu.iota {dimensions = array<i32: 1>} : vector<16x128xi32>
    %c64_i32 = arith.constant 64 : i32
    %33 = vector.broadcast %c64_i32 : i32 to vector<16x128xi32>
    %34 = arith.cmpi slt, %32, %33 : vector<16x128xi32>
    %35 = arith.select %34, %21, %31 : vector<16x128xi1>, vector<16x128xf32>
    %c0_18 = arith.constant 0 : index
    %c0_19 = arith.constant 0 : index
    %36 = vector.load %arg6[%c0_18, %c0_19] : memref<16x128xf32, #tpu.memory_space<vmem>>, vector<16x128xf32>
    tpu.vector_store %arg6[%c0_18, %c0_19], %35 {strides = array<i32>} : memref<16x128xf32, #tpu.memory_space<vmem>>, vector<16x128xf32>,
    return
  }
  func.func @transform_0(%arg0: i32) -> (i32, i32) {
    %c0_i32 = arith.constant 0 : i32
    %c0_i32_0 = arith.constant 0 : i32
    return %arg0, %c0_i32 : i32, i32
  }
  func.func @transform_1(%arg0: i32) -> (i32, i32) {
    %c0_i32 = arith.constant 0 : i32
    %c0_i32_0 = arith.constant 0 : i32
    %c0_i32_1 = arith.constant 0 : i32
    return %c0_i32, %c0_i32_0 : i32, i32
  }
  func.func @transform_2(%arg0: i32) -> (i32, i32) {
    %c0_i32 = arith.constant 0 : i32
    %c0_i32_0 = arith.constant 0 : i32
    %c0_i32_1 = arith.constant 0 : i32
    return %c0_i32, %c0_i32_0 : i32, i32
  }
  func.func @transform_3(%arg0: i32) -> (i32, i32) {
    %c0_i32 = arith.constant 0 : i32
    %c0_i32_0 = arith.constant 0 : i32
    %c0_i32_1 = arith.constant 0 : i32
    return %c0_i32, %c0_i32_0 : i32, i32
  }
  func.func @transform_4(%arg0: i32) -> (i32, i32) {
    %c0_i32 = arith.constant 0 : i32
    %c0_i32_0 = arith.constant 0 : i32
    %c0_i32_1 = arith.constant 0 : i32
    return %c0_i32, %c0_i32_0 : i32, i32
  }
  func.func @transform_5(%arg0: i32) -> (i32, i32) {
    %c0_i32 = arith.constant 0 : i32
    %c0_i32_0 = arith.constant 0 : i32
    return %arg0, %c0_i32 : i32, i32
  }
}

</mosaic_0001>

<bundles_post_ra>
// kernel: tpu_custom_call.1
= control target key start
LH: loop header
LB: loop body
LE: loop exit
PB: predicated region body
PF: predicated region fallthrough
CT: control target
= control target key end

     0   :  { %10 = vsyncpa [#allocation3], 0  ;;  %s718_s0 = inlined_call_operand.hbm [shape: bf16[16,10], index: 0, kind: input, shape index: {}]   ;;  %s719_s1 = inlined_call_operand.hbm [shape: bf16[10,64], index: 1, kind: input, shape index: {}]   ;;  %s720_s2 = inlined_call_operand.hbm [shape: bf16[64,64], index: 2, kind: input, shape index: {}]   ;;  %s721_s3 = inlined_call_operand.hbm [shape: bf16[64,128], index: 3, kind: input, shape index: {}]   ;;  %s722_s4 = inlined_call_operand.vmem [shape: f32[3,128], index: 4, kind: input, shape index: {}]   ;;  %s723_s5 = inlined_call_operand.hbm [shape: f32[16,128], index: 5, kind: output, shape index: {}]  }
   0x1   :  { %11 = vsyncpa [#allocation6], 0 }
   0x2   :  { %12 = vsyncpa [#allocation9], 0 }
   0x3   :  { %13 = vsyncpa [#allocation4], 0  ;;  %s577_s18 = smov [#allocation5]   ;;  %s578_s20 = smov [#allocation2]  }
   0x4   :  { %s31_s19 = sshll.u32 %s577_s18, 4  ;;  %s19_s21 = sshll.u32 %s578_s20, 4  ;;  %s32_s19 = int_to_ptr.vmem [resolvable:$true] %s31_s19  ;;  %s618_s21 = int_to_ptr.vmem [resolvable:$true] %s19_s21 }
   0x5   :  { %s459_s24 = scalar_lea.hbm %s719_s1, 128 }
   0x6   :  { %p460_p0 = scmp.ne.s32.totalorder %s719_s1, %s459_s24  ;;  %p463_p1 = scmp.lt.u32.totalorder %s459_s24, %s719_s1 }
   0x8   :  { %p465_p2 = pnand %p463_p1, %p460_p0 }
   0xa   :  { %468 = shalt.err (!%p465_p2)
}
   0xb   :  { %s469_s29 = scalar_lea.vmem %s32_s19, 128  ;;  %p474_p4 = scmp.lt.s32.totalorder %s32_s19, %s32_s19 }
   0xc   :  { %p470_p3 = scmp.ne.s32.totalorder %s32_s19, %s469_s29  ;;  %p475_p5 = scmp.lt.s32.totalorder %s469_s29, %s469_s29 }
   0xe   :  { %p476_p6 = por %p475_p5, %p474_p4 }
  0x10   :  { %p477_p7 = pnand %p476_p6, %p470_p3 }
  0x12   :  { %480 = shalt.err (!%p477_p7)
}
  0x13   :  { %s579_s30 = smov 64   ;;  %s580_s6 = smov 4  }
  0x14   :  { %37 = dma.hbm_to_vmem [thread:$0]  %s719_s1, 128, %s32_s19, [#allocation6], %s579_s30, %s579_s30, %s580_s6  }
  0x15   :  { %s481_s11 = scalar_lea.hbm %s718_s0, 128 }
  0x16   :  { %p482_p8 = scmp.ne.s32.totalorder %s718_s0, %s481_s11  ;;  %p485_p9 = scmp.lt.u32.totalorder %s481_s11, %s718_s0 }
  0x18   :  { %p487_p10 = pnand %p485_p9, %p482_p8 }
  0x1a   :  { %490 = shalt.err (!%p487_p10)
}
  0x1b   :  { %s491_s16 = scalar_lea.vmem %s618_s21, 128  ;;  %p496_p12 = scmp.lt.s32.totalorder %s618_s21, %s618_s21 }
  0x1c   :  { %p492_p11 = scmp.ne.s32.totalorder %s618_s21, %s491_s16  ;;  %p497_p13 = scmp.lt.s32.totalorder %s491_s16, %s491_s16 }
  0x1e   :  { %p498_p0 = por %p497_p13, %p496_p12 }
  0x20   :  { %p499_p1 = pnand %p498_p0, %p492_p11 }
  0x22   :  { %502 = shalt.err (!%p499_p1)
}
  0x23   :  { %25 = dma.hbm_to_vmem [thread:$0]  %s718_s0, 128, %s618_s21, [#allocation3], %s579_s30, %s579_s30, %s580_s6  }
  0x24   :  { %s581_s18 = smov [#allocation7]   ;;  %s582_s20 = smov [#allocation8]  }
  0x25   :  { %s43_s19 = sshll.u32 %s581_s18, 4  ;;  %s55_s22 = sshll.u32 %s582_s20, 4  ;;  %s44_s19 = int_to_ptr.vmem [resolvable:$true] %s43_s19  ;;  %s655_s22 = int_to_ptr.vmem [resolvable:$true] %s55_s22 }
  0x26   :  { %s503_s25 = scalar_lea.hbm %s720_s2, 512 }
  0x27   :  { %p504_p2 = scmp.ne.s32.totalorder %s720_s2, %s503_s25  ;;  %p507_p3 = scmp.lt.u32.totalorder %s503_s25, %s720_s2 }
  0x29   :  { %p509_p4 = pnand %p507_p3, %p504_p2 }
  0x2b   :  { %512 = shalt.err (!%p509_p4)
}
  0x2c   :  { %s513_s0 = scalar_lea.vmem %s44_s19, 512  ;;  %p518_p6 = scmp.lt.s32.totalorder %s44_s19, %s44_s19 }
  0x2d   :  { %p514_p5 = scmp.ne.s32.totalorder %s44_s19, %s513_s0  ;;  %p519_p7 = scmp.lt.s32.totalorder %s513_s0, %s513_s0 }
  0x2f   :  { %p520_p8 = por %p519_p7, %p518_p6 }
  0x31   :  { %p521_p9 = pnand %p520_p8, %p514_p5 }
  0x33   :  { %524 = shalt.err (!%p521_p9)
}
  0x34   :  { %49 = dma.hbm_to_vmem [thread:$0]  %s720_s2, 512, %s44_s19, [#allocation6], %s579_s30, %s579_s30, %s580_s6  }
  0x35   :  { %s525_s10 = scalar_lea.hbm %s721_s3, 512 }
  0x36   :  { %p526_p10 = scmp.ne.s32.totalorder %s721_s3, %s525_s10  ;;  %p529_p11 = scmp.lt.u32.totalorder %s525_s10, %s721_s3 }
  0x38   :  { %p531_p12 = pnand %p529_p11, %p526_p10 }
  0x3a   :  { %534 = shalt.err (!%p531_p12)
}
  0x3b   :  { %s535_s15 = scalar_lea.vmem %s655_s22, 512  ;;  %p540_p0 = scmp.lt.s32.totalorder %s655_s22, %s655_s22 }
  0x3c   :  { %p536_p13 = scmp.ne.s32.totalorder %s655_s22, %s535_s15  ;;  %p541_p1 = scmp.lt.s32.totalorder %s535_s15, %s535_s15 }
  0x3e   :  { %p542_p2 = por %p541_p1, %p540_p0 }
  0x40   :  { %p543_p3 = pnand %p542_p2, %p536_p13 }
  0x42   :  { %546 = shalt.err (!%p543_p3)
}
  0x43   :  { %61 = dma.hbm_to_vmem [thread:$0]  %s721_s3, 512, %s655_s22, [#allocation9], %s579_s30, %s579_s30, %s580_s6  }
  0x44   :  { %569 = dma.done.wait [#allocation3], 128  }
  0x45   :  { %570 = vsyncadd [#allocation3], 4294967168 }
  0x46   :  { %571 = dma.done.wait [#allocation6], 640  }
  0x47   :  { %572 = vsyncadd [#allocation6], 4294966656 }
  0x48   :  { %573 = dma.done.wait [#allocation9], 512  }
  0x49   :  { %574 = vsyncadd [#allocation9], 4294966784  ;;  %v583_v0 = vmov 0.0   ;;  %vm584_vm0 = vmmov 0   ;;  %vm100_vm1 = vcmask 1044480   ;;  %v442_v2 = vld [vmem:[#allocation2] sm:$0xff]   ;;  %v346_v52 = vlaneseq }
  0x4a   :  { %400 = vmatprep.subr.bf16.mxu0 %v583_v0  ;;  %402 = vmatprep.mubr.msk.bf16.mxu0 %vm584_vm0, %v583_v0  ;;  %v441_v1 = vld [vmem:[#allocation5] sm:$0x1f]   ;;  %v443_v4 = vld [vmem:[#allocation7] sm:$0xff]   ;;  %vm96_vm2 = vcmask 80896   ;;  %v444_v5 = vld [vmem:[#allocation7 + $0x8] sm:$0xff]   ;;  %vm185_vm3 = vcmask 523264  }
  0x4b   :  { %406 = vmatprep.subr.bf16.mxu1 %v583_v0  ;;  %414 = vmatprep.mubr.msk.bf16.mxu1 %vm584_vm0, %v583_v0  ;;  %v102_v3 = vsel %vm100_vm1, %v441_v1, 0  ;;  %v445_v6 = vld [vmem:[#allocation7 + $0x10] sm:$0xff]   ;;  %v446_v7 = vld [vmem:[#allocation7 + $0x18] sm:$0xff]   ;;  %v447_v8 = vld [vmem:[#allocation8] sm:$0xff]   ;;  %v347_v59 = vand.u32 127, %v346_v52 }
  0x4c   :  { %401 = vmatpush3.bf16.msra.mxu0 %v102_v3  ;;  %407 = vmatpush3.bf16.msra.mxu1 %v443_v4  ;;  %v448_v9 = vld [vmem:[#allocation8 + $0x8] sm:$0xff]   ;;  %v372_v10 = vld [vmem:[%s722_s4] ss:$0 sm:$0xff]  ;;  %v450_v21 = vld [vmem:[#allocation8 + $0x18] sm:$0xff]  }
  0x4d   :  { %418 = vmatprep.subr.bf16.mxu0 %v583_v0  ;;  %408 = vmatprep.subr.bf16.mxu1 %v583_v0  ;;  %v449_v20 = vld [vmem:[#allocation8 + $0x10] sm:$0xff]   ;;  %vm348_vm6 = vcmp.lt.s32.totalorder %v347_v59, 64 }
  0x4e   :  { %v376_v22 = vld [vmem:[%s722_s4 + $0x1] ss:$0 sm:$0xff]  ;;  %v382_v32 = vld [vmem:[%s722_s4 + $0x2] ss:$0 sm:$0xff]  ;;  %s585_s4 = smov [#allocation10]  }
  0x4f   :  { %403 = vmatmul.mubr.msk.bf16.vlgmr.msra.gmra.mrb[0].mxu0 %vm96_vm2, %v442_v2  ;;  %s358_s19 = sshll.u32 %s585_s4, 4  ;;  %s359_s19 = int_to_ptr.vmem [resolvable:$true] %s358_s19 }
  0x50   :  { %426 = vmatprep.mubr.msk.bf16.mxu0 %vm584_vm0, %v583_v0  ;;  %409 = vmatpush3.bf16.msra.mxu1 %v444_v5  ;;  %s547_s20 = scalar_lea.vmem %s359_s19, 256  ;;  %p552_p5 = scmp.lt.s32.totalorder %s359_s19, %s359_s19 }
  0x51   :  { %410 = vmatprep.subr.bf16.mxu1 %v583_v0  ;;  %419 = vmatpush3.bf16.msra.mxu0 %v447_v8  ;;  %p548_p4 = scmp.ne.s32.totalorder %s359_s19, %s547_s20  ;;  %p553_p6 = scmp.lt.s32.totalorder %s547_s20, %s547_s20 }
  0x52   :  { %420 = vmatprep.subr.bf16.mxu0 %v583_v0 }
  0x53   :  { %p554_p7 = por %p553_p6, %p552_p5 }
  0x54   :  { %411 = vmatpush3.bf16.msra.mxu1 %v445_v6 }
  0x55   :  { %412 = vmatprep.subr.bf16.mxu1 %v583_v0  ;;  %421 = vmatpush3.bf16.msra.mxu0 %v448_v9  ;;  %p555_p8 = pnand %p554_p7, %p548_p4 }
  0x56   :  { %422 = vmatprep.subr.bf16.mxu0 %v583_v0 }
  0x58   :  { %413 = vmatpush3.bf16.msra.mxu1 %v446_v7 }
  0x59   :  { %423 = vmatpush3.bf16.msra.mxu0 %v449_v20 }
  0x5a   :  { %424 = vmatprep.subr.bf16.mxu0 %v583_v0 }
  0x5d   :  { %425 = vmatpush3.bf16.msra.mxu0 %v450_v21 }
 0x122   :  { %v138_v11 = vpop.f32.mrb[0].mxu0 }
 0x123   :  { %v139_v12 = vadd.f32 %v372_v10, %v138_v11  ;;  %v404_v13 = vpop.f32.mrb[1].mxu0 }
 0x124   :  { %v141_v14 = vpop.f32.mrb[2].mxu0 }
 0x125   :  { %v142_v15 = vadd.f32 %v372_v10, %v141_v14  ;;  %v405_v16 = vpop.f32.mrb[3].mxu0  ;;  %v145_v17 = vmax.f32 %v139_v12, 0.0 }
 0x127   :  { %v146_v18 = vmax.f32 %v142_v15, 0.0 }
 0x129   :  { %v147_v19 = vpack.c.bf16 %v146_v18, %v145_v17 }
 0x12b   :  { %415 = vmatmul.mubr.msk.bf16.vlgmr.msra.gmra.mrb[0].mxu1 %vm185_vm3, %v147_v19 }
 0x1fe   :  { %v223_v23 = vpop.f32.mrb[0].mxu1 }
 0x1ff   :  { %v224_v24 = vadd.f32 %v376_v22, %v223_v23  ;;  %v416_v25 = vpop.f32.mrb[1].mxu1 }
 0x200   :  { %v226_v26 = vpop.f32.mrb[2].mxu1 }
 0x201   :  { %v227_v27 = vadd.f32 %v376_v22, %v226_v26  ;;  %v417_v28 = vpop.f32.mrb[3].mxu1  ;;  %v230_v29 = vmax.f32 %v224_v24, 0.0 }
 0x203   :  { %v231_v30 = vmax.f32 %v227_v27, 0.0 }
 0x205   :  { %v232_v31 = vpack.c.bf16 %v231_v30, %v230_v29 }
 0x207   :  { %427 = vmatmul.mubr.msk.bf16.vlgmr.msra.gmra.mrb[4].mxu0 %vm185_vm3, %v232_v31 }
 0x2da   :  { %v307_v33 = vpop.f32.mrb[4].mxu0 }
 0x2db   :  { %v308_v34 = vadd.f32 %v382_v32, %v307_v33  ;;  %v428_v35 = vpop.f32.mrb[5].mxu0 }
 0x2dc   :  { %v310_v36 = vpop.f32.mrb[6].mxu0 }
 0x2dd   :  { %v316_v37 = vand.u32 2147483647, %v308_v34  ;;  %v311_v38 = vadd.f32 %v382_v32, %v310_v36  ;;  %v429_v39 = vpop.f32.mrb[7].mxu0  ;;  %v314_v61 = vmax.f32 %v308_v34, 0.0 }
 0x2df   :  { %v318_v40 = vsub.f32 0.0, %v316_v37  ;;  %v317_v41 = vand.u32 2147483647, %v311_v38  ;;  %v315_v2 = vmax.f32 %v311_v38, 0.0 }
 0x2e1   :  { %v320_v42 = vmul.f32 1.442695, %v318_v40  ;;  %v319_v43 = vsub.f32 0.0, %v317_v41 }
 0x2e3   :  { %451 = vpow2.f32 %v320_v42  ;;  %v322_v44 = vmul.f32 1.442695, %v319_v43 }
 0x2e5   :  { %453 = vpow2.f32 %v322_v44 }
 0x2ed   :  { %v452_v45 = vpop.eup %451 }
 0x2ee   :  { %v324_v46 = vadd.f32 1.0, %v452_v45  ;;  %v327_v49 = vmul.f32 -0.5, %v452_v45  ;;  %v330_v53 = vand.u32 2147483647, %v452_v45 }
 0x2ef   :  { %v454_v47 = vpop.eup %453 }
 0x2f0   :  { %455 = vlog2.f32 %v324_v46  ;;  %v333_v48 = vadd.f32 1.0, %v454_v47  ;;  %v336_v50 = vmul.f32 -0.5, %v454_v47  ;;  %v328_v51 = vadd.f32 1.0, %v327_v49 }
 0x2f1   :  { %v339_v56 = vand.u32 2147483647, %v454_v47  ;;  %vm331_vm4 = vcmp.lt.f32.partialorder %v330_v53, 0.0004427343 }
 0x2f2   :  { %457 = vlog2.f32 %v333_v48  ;;  %v337_v54 = vadd.f32 1.0, %v336_v50  ;;  %v329_v58 = vmul.f32 %v452_v45, %v328_v51 }
 0x2f3   :  { %vm340_vm5 = vcmp.lt.f32.partialorder %v339_v56, 0.0004427343 }
 0x2f4   :  { %v338_v0 = vmul.f32 %v454_v47, %v337_v54 }
 0x2fa   :  { %v456_v55 = vpop.eup %455 }
 0x2fb   :  { %v326_v57 = vmul.f32 0.6931472, %v456_v55 }
 0x2fc   :  { %v458_v60 = vpop.eup %457 }
 0x2fd   :  { %v332_v62 = vsel %vm331_vm4, %v329_v58, %v326_v57  ;;  %v335_v63 = vmul.f32 0.6931472, %v458_v60 }
 0x2fe   :  { %v342_v1 = vadd.f32 %v332_v62, %v314_v61 }
 0x2ff   :  { %v341_v3 = vsel %vm340_vm5, %v338_v0, %v335_v63 }
 0x300   :  { %v344_v4 = vadd.f32 1e-06, %v342_v1  ;;  %v343_v5 = vadd.f32 %v341_v3, %v315_v2 }
 0x302   :  { %v349_v6 = vsel %vm348_vm6, %v308_v34, %v344_v4  ;;  %v345_v7 = vadd.f32 1e-06, %v343_v5 }
 0x303   :  { %351 = vst [vmem:[#allocation10] sm:$0xff] %v349_v6 }
 0x304   :  { %v350_v8 = vsel %vm348_vm6, %v311_v38, %v345_v7 }
 0x305   :  { %352 = vst [vmem:[#allocation10 + $0x8] sm:$0xff] %v350_v8 }
 0x306   :  { %558 = shalt.err (!%p555_p8)
}
 0x307   :  { %s559_s24 = scalar_lea.hbm %s723_s5, 256 }
 0x308   :  { %p560_p9 = scmp.ne.s32.totalorder %s723_s5, %s559_s24  ;;  %p563_p10 = scmp.lt.u32.totalorder %s559_s24, %s723_s5 }
 0x30a   :  { %p565_p11 = pnand %p563_p10, %p560_p9 }
 0x30c   :  { %568 = shalt.err (!%p565_p11)
}
 0x30d   :  { %s586_s29 = smov 128   ;;  %s587_s0 = smov 8  }
 0x30e   :  { %364 = dma.vmem_to_hbm [thread:$0]  %s359_s19, 256, %s723_s5, [#allocation4], %s586_s29, %s586_s29, %s587_s0  }
 0x30f   :  { %575 = dma.done.wait [#allocation4], 256  }
 0x310   :  { %576 = vsyncadd [#allocation4], 4294967040 }
 0x311   :  { %368 = vsyncpa [#allocation3], 1 }
 0x312   :  { %369 = vsyncpa [#allocation6], 1 }
 0x313   :  { %370 = vsyncpa [#allocation9], 1 }
 0x314   :  { %371 = vsyncpa [#allocation4], 1 }

</bundles_post_ra>
